<compile_context>
chip_gen: v7x
topology: tpu7x:2x2x1
jax: 0.10.0
libtpu: 0.0.40
codegen_flags: <defaults>
</compile_context>

<pallas_src>
import jax
import jax.numpy as jnp
from jax import lax
from jax.experimental import pallas as pl
from jax.experimental.pallas import tpu as pltpu


def _sdf_line_kernel(q_ref, a_ref, b_ref, consts_ref, out_ref):
    # q_ref      : [TN, 8]  augmented queries [qx, qy, qz, |q|^2, 1, 0, 0, 0]
    # a_ref      : [8, TL]  columns [abd_x, abd_y, abd_z, 0, -s.abd, 0, 0, 0]
    # b_ref      : [8, TL]  columns [-2sx, -2sy, -2sz, 1, |s|^2, 0, 0, 0]
    # consts_ref : [2, TL]  rows: |AB|^2, radii
    # out_ref    : [TN, TL] signed distance
    q = q_ref[...]                                            # [TN, 8]
    ab_len2 = consts_ref[0:1, :]                              # [1, TL]
    radii = consts_ref[1:2, :]                                # [1, TL]

    hi = lax.Precision.HIGHEST
    # MXU: both per-element dot products AND the affine terms in one pass each.
    t_raw = jnp.dot(q, a_ref[...], precision=hi,
                    preferred_element_type=jnp.float32)       # (q - s).ABd
    ap_norm2 = jnp.dot(q, b_ref[...], precision=hi,
                       preferred_element_type=jnp.float32)    # |q - s|^2

    t = jnp.clip(t_raw, 0.0, 1.0)

    # d^2 = |t*AB - AP|^2 = |AP|^2 + |AB|^2 * (t^2 - 2*t*t_raw)
    d2 = ap_norm2 + ab_len2 * (t - 2.0 * t_raw) * t
    d2 = jnp.maximum(d2, 0.0)                                 # cancellation guard
    out_ref[...] = jnp.sqrt(d2) - radii


def _round_up(x, m):
    return ((x + m - 1) // m) * m


def sdf_line(query_positions, starts, ends, radii, *, tn=512, tl=1024):
    """query_positions [N,3], starts/ends [L,3], radii [L,1] -> [N, L, 1] (float32)."""
    q = query_positions.astype(jnp.float32)
    starts = starts.astype(jnp.float32)
    ends = ends.astype(jnp.float32)
    radii = radii.astype(jnp.float32)

    N = q.shape[0]
    L = starts.shape[0]

    # Effective tile sizes: tn multiple of 8, tl multiple of 128, never larger
    # than the padded problem.
    tn_eff = min(tn, _round_up(N, 8))
    tl_eff = min(tl, _round_up(L, 128))
    Np = _round_up(N, tn_eff)
    Lp = _round_up(L, tl_eff)

    # v7x megacore: make sure a degenerate 1x1 grid is split so both TensorCores
    # get work (perf-neutral on single-core v5e/v6e).
    if (Np // tn_eff == 1) and (Lp // tl_eff == 1):
        if tl_eff >= 256:
            tl_eff //= 2
        elif tn_eff >= 16:
            tn_eff //= 2

    # ---- per-line parameter setup (plain JAX glue) ----
    ab = ends - starts                                        # [L, 3]
    length2 = jnp.sum(ab * ab, axis=-1, keepdims=True)        # [L, 1]
    abd = ab / length2                                        # [L, 3]

    s_dot_abd = jnp.sum(starts * abd, axis=-1)                # [L]
    s_norm2 = jnp.sum(starts * starts, axis=-1)               # [L]
    ab_len2 = length2[:, 0]                                   # [L]

    # Augmented LHS: [qx, qy, qz, |q|^2, 1, 0, 0, 0]
    q_norm2 = jnp.sum(q * q, axis=-1, keepdims=True)          # [N, 1]
    q_aug = jnp.concatenate(
        [q, q_norm2, jnp.ones((N, 1), jnp.float32), jnp.zeros((N, 3), jnp.float32)],
        axis=-1)                                              # [N, 8]

    # RHS-A: matmul #1 -> t_raw = q.ABd - s.ABd
    rhs_a = jnp.concatenate(
        [abd.T, jnp.zeros((1, L), jnp.float32), -s_dot_abd[None, :],
         jnp.zeros((3, L), jnp.float32)], axis=0)             # [8, L]

    # RHS-B: matmul #2 -> |AP|^2 = |q|^2 - 2 q.s + |s|^2
    rhs_b = jnp.concatenate(
        [-2.0 * starts.T, jnp.ones((1, L), jnp.float32), s_norm2[None, :],
         jnp.zeros((3, L), jnp.float32)], axis=0)             # [8, L]

    consts = jnp.stack([ab_len2, radii[:, 0]], axis=0)        # [2, L]

    # Pad N / L up to tile multiples (padded rows/columns are all-zero and yield
    # finite garbage that is sliced off below).
    q_p = jnp.pad(q_aug, ((0, Np - N), (0, 0)))               # [Np, 8]
    rhs_a_p = jnp.pad(rhs_a, ((0, 0), (0, Lp - L)))           # [8, Lp]
    rhs_b_p = jnp.pad(rhs_b, ((0, 0), (0, Lp - L)))           # [8, Lp]
    consts_p = jnp.pad(consts, ((0, 0), (0, Lp - L)))         # [2, Lp]

    # Lines on the outer grid axis -> the three per-line parameter blocks keep a
    # constant block index across the inner (query) axis and are not re-fetched.
    grid = (Lp // tl_eff, Np // tn_eff)

    cost = pl.CostEstimate(
        flops=2 * Np * Lp * 8 * 2 + 10 * Np * Lp,
        transcendentals=Np * Lp,
        bytes_accessed=4 * (Np * Lp + Np * 8 + 2 * 8 * Lp + 2 * Lp),
    )

    out = pl.pallas_call(
        _sdf_line_kernel,
        out_shape=jax.ShapeDtypeStruct((Np, Lp), jnp.float32),
        grid_spec=pltpu.PrefetchScalarGridSpec(
            num_scalar_prefetch=0,
            grid=grid,
            in_specs=[
                pl.BlockSpec((tn_eff, 8), lambda j, i: (i, 0)),   # augmented q
                pl.BlockSpec((8, tl_eff), lambda j, i: (0, j)),   # RHS-A (t_raw)
                pl.BlockSpec((8, tl_eff), lambda j, i: (0, j)),   # RHS-B (|AP|^2)
                pl.BlockSpec((2, tl_eff), lambda j, i: (0, j)),   # |AB|^2, radii
            ],
            out_specs=pl.BlockSpec((tn_eff, tl_eff), lambda j, i: (i, j)),
        ),
        compiler_params=pltpu.CompilerParams(
            dimension_semantics=("parallel", "parallel"),
            vmem_limit_bytes=32 * 1024 * 1024),
        cost_estimate=cost,
    )(q_p, rhs_a_p, rhs_b_p, consts_p)

    # TODO(synk): if the consumer tolerates bf16, casting the store to bf16 halves
    # output bytes (big win on write-bound v5e) but changes the module's dtype.
    return out[:N, :L, None]                                  # [N, L, 1]


def sdf_line_ref(query_positions, starts, ends, radii):
    """Pure-JAX reference matching the PyTorch forward (direct ||t*AB - AP|| form)."""
    ab = ends - starts
    length2 = jnp.sum(ab * ab, axis=-1, keepdims=True)
    abd = ab / length2
    ap = query_positions[..., None, :] - starts               # [N, L, 3]
    t = jnp.clip(jnp.sum(ap * abd, axis=-1, keepdims=True), 0.0, 1.0)
    diff = t * ab - ap
    dist = jnp.sqrt(jnp.sum(diff * diff, axis=-1, keepdims=True))
    return dist - radii


if __name__ == "__main__":
    key = jax.random.PRNGKey(0)
    k1, k2, k3, k4 = jax.random.split(key, 4)

    N = 37    # number of query points (non-multiple of 8 -> exercises padding)
    L = 200   # number of line segments (non-multiple of 128 -> exercises padding)

    starts = jax.random.normal(k1, (L, 3), jnp.float32)
    ends = starts + jax.random.normal(k2, (L, 3), jnp.float32) + 0.5
    radii = jax.random.uniform(k3, (L, 1), jnp.float32, 0.05, 0.3)
    query_positions = jax.random.normal(k4, (N, 3), jnp.float32) * 2.0

    out = sdf_line(query_positions, starts, ends, radii)
    out = jax.block_until_ready(out)

    ref = sdf_line_ref(query_positions, starts, ends, radii)
    assert out.shape == (N, L, 1), out.shape

    # Scale-aware check: the algebraic d^2 form loses a few bits for points very
    # near a segment (error in d ~ eps*|AP|^2 / (2*d)), so accept either a small
    # absolute error in d, or a small error in d^2 (err * dist).
    err = jnp.abs(out - ref)
    dist_ref = ref + radii[None, :, :]          # distance to the segment itself
    ok = (err <= 2e-4) | (err * jnp.maximum(dist_ref, 0.0) <= 2e-4)
    assert bool(jnp.all(ok)), float(jnp.max(err))

    print("KERNEL_OK")
</pallas_src>

<mosaic_0001>
module attributes {stable_mosaic.version = 11 : i64} {
  func.func @_sdf_line_kernel(%arg0: i32, %arg1: i32, %arg2: memref<40x8xf32, #tpu.memory_space<vmem>>, %arg3: memref<8x128xf32, #tpu.memory_space<vmem>>, %arg4: memref<8x128xf32, #tpu.memory_space<vmem>>, %arg5: memref<2x128xf32, #tpu.memory_space<vmem>>, %arg6: memref<40x128xf32, #tpu.memory_space<vmem>>) attributes {dimension_semantics = [#tpu.dimension_semantics<parallel>, #tpu.dimension_semantics<parallel>], iteration_bounds = array<i64: 2, 1>, scalar_prefetch = 0 : i64, scratch_operands = 0 : i64, tpu.core_type = #tpu.core_type<tc>, window_params = [{transform_indices = @transform_0, window_bounds = array<i64: 40, 8>}, {transform_indices = @transform_1, window_bounds = array<i64: 8, 128>}, {transform_indices = @transform_2, window_bounds = array<i64: 8, 128>}, {transform_indices = @transform_3, window_bounds = array<i64: 2, 128>}, {transform_indices = @transform_4, window_bounds = array<i64: 40, 128>}]} {
    %c0 = arith.constant 0 : index
    %c0_0 = arith.constant 0 : index
    %0 = vector.load %arg2[%c0, %c0_0] : memref<40x8xf32, #tpu.memory_space<vmem>>, vector<40x8xf32>
    %c0_1 = arith.constant 0 : index
    %c0_2 = arith.constant 0 : index
    %1 = vector.load %arg5[%c0_1, %c0_2] : memref<2x128xf32, #tpu.memory_space<vmem>>, vector<1x128xf32>
    %c1 = arith.constant 1 : index
    %c0_3 = arith.constant 0 : index
    %2 = vector.load %arg5[%c1, %c0_3] : memref<2x128xf32, #tpu.memory_space<vmem>>, vector<1x128xf32>
    %c0_4 = arith.constant 0 : index
    %c0_5 = arith.constant 0 : index
    %3 = vector.load %arg3[%c0_4, %c0_5] : memref<8x128xf32, #tpu.memory_space<vmem>>, vector<8x128xf32>
    %cst = arith.constant dense<0.000000e+00> : vector<40x128xf32>
    %4 = tpu.matmul %0, %3, %cst {dimension_numbers = #tpu.dot_dimension_numbers<[1], [0], [0], [1], [0, 0, 1, 1], [], []>, precision = #tpu.contract_precision<fp32>} : vector<40x8xf32>, vector<8x128xf32>, vector<40x128xf32> -> vector<40x128xf32>
    %c0_6 = arith.constant 0 : index
    %c0_7 = arith.constant 0 : index
    %5 = vector.load %arg4[%c0_6, %c0_7] : memref<8x128xf32, #tpu.memory_space<vmem>>, vector<8x128xf32>
    %cst_8 = arith.constant dense<0.000000e+00> : vector<40x128xf32>
    %6 = tpu.matmul %0, %5, %cst_8 {dimension_numbers = #tpu.dot_dimension_numbers<[1], [0], [0], [1], [0, 0, 1, 1], [], []>, precision = #tpu.contract_precision<fp32>} : vector<40x8xf32>, vector<8x128xf32>, vector<40x128xf32> -> vector<40x128xf32>
    %cst_9 = arith.constant 0.000000e+00 : f32
    %cst_10 = arith.constant 1.000000e+00 : f32
    %7 = vector.broadcast %cst_9 : f32 to vector<40x128xf32>
    %8 = arith.maximumf %7, %4 : vector<40x128xf32>
    %9 = vector.broadcast %cst_10 : f32 to vector<40x128xf32>
    %10 = arith.minimumf %9, %8 : vector<40x128xf32>
    %cst_11 = arith.constant 2.000000e+00 : f32
    %11 = vector.broadcast %cst_11 : f32 to vector<40x128xf32>
    %12 = arith.mulf %11, %4 : vector<40x128xf32>
    %13 = arith.subf %10, %12 : vector<40x128xf32>
    %14 = vector.broadcast %1 : vector<1x128xf32> to vector<40x128xf32>
    %15 = arith.mulf %14, %13 : vector<40x128xf32>
    %16 = arith.mulf %15, %10 : vector<40x128xf32>
    %17 = arith.addf %6, %16 : vector<40x128xf32>
    %cst_12 = arith.constant 0.000000e+00 : f32
    %18 = vector.broadcast %cst_12 : f32 to vector<40x128xf32>
    %19 = arith.maximumf %17, %18 : vector<40x128xf32>
    %20 = math.sqrt %19 : vector<40x128xf32>
    %21 = vector.broadcast %2 : vector<1x128xf32> to vector<40x128xf32>
    %22 = arith.subf %20, %21 : vector<40x128xf32>
    %c0_13 = arith.constant 0 : index
    %c0_14 = arith.constant 0 : index
    %23 = vector.load %arg6[%c0_13, %c0_14] : memref<40x128xf32, #tpu.memory_space<vmem>>, vector<40x128xf32>
    tpu.vector_store %arg6[%c0_13, %c0_14], %22 {strides = array<i32>} : memref<40x128xf32, #tpu.memory_space<vmem>>, vector<40x128xf32>,
    return
  }
  func.func @transform_0(%arg0: i32, %arg1: i32) -> (i32, i32) {
    %c0_i32 = arith.constant 0 : i32
    %c0_i32_0 = arith.constant 0 : i32
    return %arg1, %c0_i32 : i32, i32
  }
  func.func @transform_1(%arg0: i32, %arg1: i32) -> (i32, i32) {
    %c0_i32 = arith.constant 0 : i32
    %c0_i32_0 = arith.constant 0 : i32
    return %c0_i32, %arg0 : i32, i32
  }
  func.func @transform_2(%arg0: i32, %arg1: i32) -> (i32, i32) {
    %c0_i32 = arith.constant 0 : i32
    %c0_i32_0 = arith.constant 0 : i32
    return %c0_i32, %arg0 : i32, i32
  }
  func.func @transform_3(%arg0: i32, %arg1: i32) -> (i32, i32) {
    %c0_i32 = arith.constant 0 : i32
    %c0_i32_0 = arith.constant 0 : i32
    return %c0_i32, %arg0 : i32, i32
  }
  func.func @transform_4(%arg0: i32, %arg1: i32) -> (i32, i32) {
    %c0_i32 = arith.constant 0 : i32
    return %arg1, %arg0 : i32, i32
  }
}

</mosaic_0001>

<bundles_post_ra>
// kernel: tpu_custom_call.1
= control target key start
LH: loop header
LB: loop body
LE: loop exit
PB: predicated region body
PF: predicated region fallthrough
CT: control target
= control target key end

     0   :  { %9 = vsyncpa [#allocation3], 0  ;;  %s2740_s0 = inlined_call_operand.vmem [shape: f32[40,8], index: 0, kind: input, shape index: {}]   ;;  %s2741_s1 = inlined_call_operand.vmem [shape: f32[8,256], index: 1, kind: input, shape index: {}]   ;;  %s2742_s2 = inlined_call_operand.vmem [shape: f32[8,256], index: 2, kind: input, shape index: {}]   ;;  %s2743_s3 = inlined_call_operand.vmem [shape: f32[2,256], index: 3, kind: input, shape index: {}]   ;;  %s2744_s4 = inlined_call_operand.hbm [shape: f32[40,256], index: 4, kind: output, shape index: {}]  }
   0x1   :  { %11 = vsyncpa [#allocation3 + $0x1], 0  ;;  %s2317_s15 = smov 0   ;;  %s2319_s16 = smov 0  }
   0x2   :  { %s2321_s17 = smov 0   ;;  %s2323_s18 = smov 0  }
   0x3   :  { %s2325_s19 = smov 0   ;;  %s2327_s20 = smov 0  }
   0x4 LB: > { %s1740_s21 = sadd.s32 4294967295, %s2284_s20   ;;  %s1741_s22 = sadd.s32 4294967294, %s2284_s20   ;;  %s2284_s20 = sphi %s2327_s20, %s17_s20   ;;  %s2280_s19 = sphi %s2325_s19, %s2751_s19   ;;  %s2276_s18 = sphi %s2323_s18, %s2750_s18   ;;  %s2272_s17 = sphi %s2321_s17, %s2749_s17   ;;  %s2268_s16 = sphi %s2319_s16, %s2748_s16   ;;  %s2264_s15 = sphi %s2317_s15, %s2747_s15  }
   0x5   : > { %s29_s23 = sadd.s32 1, %s2280_s19  ;;  %s142_s24 = sadd.s32 1, %s2272_s17 }
   0x6   : > { %p31_p0 = scmp.ge.s32.totalorder %s29_s23, 2  ;;  %p152_p1 = scmp.ne.s32.totalorder %s2272_s17, %s2268_s16 }
   0x7   : > { %p153_p2 = scmp.eq.s32.totalorder %s1740_s21, 1  ;;  %p158_p3 = scmp.ne.s32.totalorder %s2268_s16, %s2264_s15 }
   0x8   : > { %s2753_s23 = smov (%p31_p0, %s29_s23), 0  ;;  %p159_p5 = scmp.eq.s32.totalorder %s1741_s22, 1 }
   0x9   : > { %p2357_p4 = por %p153_p2, %p152_p1  ;;  %s138_s26 = ssub.s32 %s2280_s19, %s2753_s23 }
   0xa   : > { %p1745_p6 = scmp.ge.s32.totalorder %s2284_s20, 1  ;;  %p140_p7 = scmp.eq.s32.totalorder %s138_s26, 0 }
   0xb   : > { %p2364_p8 = por %p159_p5, %p158_p3  ;;  %p207_p9 = scmp.lt.s32.totalorder %s2284_s20, 3 }
   0xc   : > { %s2370_s28 = scalar_select %p140_p7, %s2272_s17, %s142_s24  }
   0xd   : > { %p208_p10 = pnand %p1745_p6, %p207_p9 }
   0xe   : > { %p251_p11 = scmp.lt.s32.totalorder (!%p208_p10), %s2276_s18, 1  ;;  %v264_v0 = vld [vmem:[%s2740_s0] sm:$0xff] (!%p208_p10)  ;;  %vm272_vm0 = vcmask (!%p208_p10), 64512   ;;  %v265_v1 = vld [vmem:[%s2740_s0 + $0x8] sm:$0xff] (!%p208_p10)  ;;  %v2286_v2 = vmov (!%p208_p10), 0.0   ;;  %v266_v5 = vld [vmem:[%s2740_s0 + $0x10] sm:$0xff] (!%p208_p10) }
   0xf   : > { %211 = sbr.rel (%p208_p10) target bundleno = 406 (0x196), region = 36  ;;  %1826 = vmatprep.subr.mxu0 (!%p208_p10), %v2286_v2  ;;  %1928 = vmatprep.subr.mxu1 (!%p208_p10), %v2286_v2  ;;  %v274_v3 = vsel (!%p208_p10), %vm272_vm0, %v264_v0, 0  ;;  %v277_v4 = vsel (!%p208_p10), %vm272_vm0, %v265_v1, 0  ;;  %v267_v6 = vld [vmem:[%s2740_s0 + $0x18] sm:$0xff] (!%p208_p10)  ;;  %v268_v7 = vld [vmem:[%s2740_s0 + $0x20] sm:$0xff] (!%p208_p10)  ;;  %vm2287_vm1 = vmmov (!%p208_p10), 0  }
  0x10   : > { %1828 = vmatprep.mubr.msk.f32.mxu0 (!%p208_p10), %vm2287_vm1, %v2286_v2  ;;  %1930 = vmatprep.mubr.msk.f32.mxu1 (!%p208_p10), %vm2287_vm1, %v2286_v2  ;;  %v2399_v8 = vand.u32 (!%p208_p10), 4294901760, %v274_v3  ;;  %v2401_v9 = vand.u32 (!%p208_p10), 4294901760, %v277_v4  ;;  %v280_v10 = vsel (!%p208_p10), %vm272_vm0, %v266_v5, 0  ;;  %v283_v11 = vsel (!%p208_p10), %vm272_vm0, %v267_v6, 0  ;;  %s242_s9 = sand.u32 (!%p208_p10), 1, %s2268_s16   ;;  %s1751_s12 = sshll.u32 (!%p208_p10), %s2276_s18, 7 }
  0x11   : > { %v2405_v12 = vand.u32 (!%p208_p10), 4294901760, %v280_v10  ;;  %v2414_v15 = vand.u32 (!%p208_p10), 4294901760, %v283_v11  ;;  %v286_v16 = vsel (!%p208_p10), %vm272_vm0, %v268_v7, 0  ;;  %s2135_s10 = smul.u32 (!%p208_p10), 40, %s242_s9  ;;  %s2686_s22 = scalar_lea.hbm (!%p208_p10), %s2744_s4, %s1751_s12 }
  0x12   : > { %v2409_v13 = vsub.f32 (!%p208_p10), %v274_v3, %v2399_v8  ;;  %v2412_v14 = vsub.f32 (!%p208_p10), %v277_v4, %v2401_v9  ;;  %v2436_v24 = vand.u32 (!%p208_p10), 4294901760, %v286_v16  ;;  %s2288_s26 = smov (!%p208_p10), [#allocation2]  }
  0x13   : > { %v2424_v17 = vsub.f32 (!%p208_p10), %v280_v10, %v2405_v12  ;;  %v2446_v28 = vsub.f32 (!%p208_p10), %v283_v11, %v2414_v15  ;;  %s2676_s11 = scalar_lea.vmem (!%p208_p10), [#allocation2], %s2135_s10  ;;  %s2210_s29 = sshll.u32 (!%p208_p10), %s2288_s26, 4  ;;  %s2211_s29 = int_to_ptr.vmem [resolvable:$false] %s2210_s29 }
  0x14   : > { %v2427_v20 = vand.u32 (!%p208_p10), 4294901760, %v2409_v13  ;;  %v2430_v21 = vand.u32 (!%p208_p10), 4294901760, %v2412_v14  ;;  %v2466_v37 = vsub.f32 (!%p208_p10), %v286_v16, %v2436_v24 }
  0x15   : > { %v2443_v27 = vand.u32 (!%p208_p10), 4294901760, %v2424_v17  ;;  %v2463_v36 = vand.u32 (!%p208_p10), 4294901760, %v2446_v28 }
  0x16   : > { %s2393_s13 = scalar_select %p251_p11, %s2276_s18, 1  ;;  %v357_v25 = vsub.f32 %v2409_v13, %v2427_v20  ;;  %v367_v26 = vsub.f32 %v2412_v14, %v2430_v21  ;;  %v2481_v44 = vand.u32 4294901760, %v2466_v37 }
  0x17   : > { %v377_v35 = vsub.f32 %v2424_v17, %v2443_v27  ;;  %v387_v43 = vsub.f32 %v2446_v28, %v2463_v36  ;;  %s2694_s18 = scalar_lea.sflag [#allocation3], %s242_s9 }
  0x18   : > { %s1746_s14 = sshll.u32 %s2393_s13, 3  ;;  %v358_v31 = vand.u32 4294901760, %v357_v25  ;;  %v368_v34 = vand.u32 4294901760, %v367_v26  ;;  %v397_v46 = vsub.f32 %v2466_v37, %v2481_v44  ;;  %s1748_s5 = sshll.u32 %s2393_s13, 1 }
  0x19   : > { %s254_s24 = scalar_lea.vmem %s2741_s1, %s1746_s14  ;;  %s258_s30 = scalar_lea.vmem %s2742_s2, %s1746_s14  ;;  %v378_v42 = vand.u32 4294901760, %v377_v35  ;;  %v388_v45 = vand.u32 4294901760, %v387_v43 }
  0x1a   : > { %v271_v18 = vld [vmem:[%s254_s24] sm:$0xff]  ;;  %v398_v47 = vand.u32 4294901760, %v397_v46  ;;  %s2669_s8 = scalar_lea.vmem %s2743_s3, %s1748_s5  ;;  %s1629_s13 = sshll.u32 %s2676_s11, 4  ;;  %s2689_s13 = int_to_ptr.vmem [resolvable:$true] %s1629_s13 }
  0x1b   : > { %v906_v19 = vld [vmem:[%s258_s30] sm:$0xff]  ;;  %v2432_v22 = vand.u32 4294901760, %v271_v18  ;;  %s2206_s24 = scalar_lea.vmem %s2689_s13, 640  ;;  %s2212_s30 = scalar_lea.vmem %s2211_s29, 1280 }
  0x1c   : > { %v2434_v23 = vand.u32 4294901760, %v906_v19  ;;  %v1749_v55 = vld [vmem:[%s2669_s8] ss:$0 sm:$0xff]  ;;  %p2207_p12 = scmp.ne.s32.totalorder %s2689_s13, %s2206_s24  ;;  %p2213_p1 = scmp.lt.s32.totalorder %s2689_s13, %s2211_s29 }
  0x1d   : > { %1827 = vmatpush3.msra.mxu0 %v2432_v22  ;;  %v2450_v29 = vsub.f32 %v271_v18, %v2432_v22  ;;  %p2214_p2 = scmp.lt.s32.totalorder %s2212_s30, %s2206_s24 }
  0x1e   : > { %1929 = vmatpush3.msra.mxu1 %v2434_v23  ;;  %v2454_v30 = vsub.f32 %v906_v19, %v2434_v23  ;;  %1843 = vmatprep.subr.mxu0 %v2286_v2  ;;  %p2208_p13 = pnand %p2207_p12, %p2357_p4 }
  0x1f   : > { %1945 = vmatprep.subr.mxu1 %v2286_v2  ;;  %v407_v32 = vand.u32 4294901760, %v2450_v29  ;;  %1829 = vmatmul.mubr.f32.vlgmr.msra.gmra.mrb[0].mxu0 %v358_v31  ;;  %p2215_p3 = por %p2214_p2, %p2213_p1 }
  0x20   : > { %v1060_v33 = vand.u32 4294901760, %v2454_v30  ;;  %1931 = vmatmul.mubr.f32.vlgmr.msra.gmra.mrb[0].mxu1 %v358_v31  ;;  %1831 = vmatprep.mubr.msk.f32.mxu0 %vm2287_vm1, %v2286_v2  ;;  %p2209_p0 = pneg %p2208_p13 }
  0x21   : > { %1933 = vmatprep.mubr.msk.f32.mxu1 %vm2287_vm1, %v2286_v2  ;;  %v408_v38 = vsub.f32 %v2450_v29, %v407_v32 }
  0x22   : > { %v1061_v39 = vsub.f32 %v2454_v30, %v1060_v33  ;;  %p2216_p5 = pnand %p2215_p3, %p2209_p0 }
  0x23   : > { %v409_v40 = vand.u32 4294901760, %v408_v38  ;;  %1832 = vmatmul.mubr.f32.gmra.mrb[2].mxu0 %v368_v34 }
  0x24   : > { %v1062_v41 = vand.u32 4294901760, %v1061_v39  ;;  %1934 = vmatmul.mubr.f32.gmra.mrb[2].mxu1 %v368_v34  ;;  %1834 = vmatprep.mubr.msk.f32.mxu0 %vm2287_vm1, %v2286_v2 }
  0x25   : > { %1844 = vmatpush3.msra.mxu0 %v409_v40  ;;  %1936 = vmatprep.mubr.msk.f32.mxu1 %vm2287_vm1, %v2286_v2 }
  0x26   : > { %1946 = vmatpush3.msra.mxu1 %v1062_v41  ;;  %1860 = vmatprep.subr.mxu0 %v2286_v2 }
  0x27   : > { %1962 = vmatprep.subr.mxu1 %v2286_v2  ;;  %1835 = vmatmul.mubr.f32.gmra.mrb[4].mxu0 %v378_v42 }
  0x28   : > { %1937 = vmatmul.mubr.f32.gmra.mrb[4].mxu1 %v378_v42  ;;  %1837 = vmatprep.mubr.msk.f32.mxu0 %vm2287_vm1, %v2286_v2 }
  0x29   : > { %1939 = vmatprep.mubr.msk.f32.mxu1 %vm2287_vm1, %v2286_v2 }
  0x2b   : > { %1838 = vmatmul.mubr.f32.gmra.mrb[6].mxu0 %v388_v45 }
  0x2c   : > { %1940 = vmatmul.mubr.f32.gmra.mrb[6].mxu1 %v388_v45  ;;  %1840 = vmatprep.mubr.msk.f32.mxu0 %vm2287_vm1, %v2286_v2 }
  0x2d   : > { %1942 = vmatprep.mubr.msk.f32.mxu1 %vm2287_vm1, %v2286_v2 }
  0x2f   : > { %1841 = vmatmul.mubr.f32.gmra.mrb[8].mxu0 %v398_v47 }
  0x30   : > { %1943 = vmatmul.mubr.f32.gmra.mrb[8].mxu1 %v398_v47  ;;  %1845 = vmatprep.mubr.msk.f32.mxu0 %vm2287_vm1, %v2286_v2 }
  0x31   : > { %1947 = vmatprep.mubr.msk.f32.mxu1 %vm2287_vm1, %v2286_v2 }
  0x33   : > { %1846 = vmatmul.mubr.f32.vlgmr.msra.gmra.mrb[0].mxu0 %v2399_v8 }
  0x34   : > { %1948 = vmatmul.mubr.f32.vlgmr.msra.gmra.mrb[0].mxu1 %v2399_v8  ;;  %1848 = vmatprep.mubr.msk.f32.mxu0 %vm2287_vm1, %v2286_v2 }
  0x35   : > { %1950 = vmatprep.mubr.msk.f32.mxu1 %vm2287_vm1, %v2286_v2  ;;  %1861 = vmatpush3.msra.mxu0 %v2450_v29 }
  0x36   : > { %1963 = vmatpush3.msra.mxu1 %v2454_v30  ;;  %1877 = vmatprep.subr.mxu0 %v2286_v2 }
  0x37   : > { %1979 = vmatprep.subr.mxu1 %v2286_v2  ;;  %1849 = vmatmul.mubr.f32.gmra.mrb[2].mxu0 %v2401_v9 }
  0x38   : > { %1951 = vmatmul.mubr.f32.gmra.mrb[2].mxu1 %v2401_v9  ;;  %1851 = vmatprep.mubr.msk.f32.mxu0 %vm2287_vm1, %v2286_v2 }
  0x39   : > { %1953 = vmatprep.mubr.msk.f32.mxu1 %vm2287_vm1, %v2286_v2 }
  0x3b   : > { %1852 = vmatmul.mubr.f32.gmra.mrb[4].mxu0 %v2405_v12 }
  0x3c   : > { %1954 = vmatmul.mubr.f32.gmra.mrb[4].mxu1 %v2405_v12  ;;  %1854 = vmatprep.mubr.msk.f32.mxu0 %vm2287_vm1, %v2286_v2 }
  0x3d   : > { %1956 = vmatprep.mubr.msk.f32.mxu1 %vm2287_vm1, %v2286_v2 }
  0x3f   : > { %1855 = vmatmul.mubr.f32.gmra.mrb[6].mxu0 %v2414_v15 }
  0x40   : > { %1957 = vmatmul.mubr.f32.gmra.mrb[6].mxu1 %v2414_v15  ;;  %1857 = vmatprep.mubr.msk.f32.mxu0 %vm2287_vm1, %v2286_v2 }
  0x41   : > { %1959 = vmatprep.mubr.msk.f32.mxu1 %vm2287_vm1, %v2286_v2 }
  0x43   : > { %1858 = vmatmul.mubr.f32.gmra.mrb[8].mxu0 %v2436_v24 }
  0x44   : > { %1960 = vmatmul.mubr.f32.gmra.mrb[8].mxu1 %v2436_v24  ;;  %1862 = vmatprep.mubr.msk.f32.mxu0 %vm2287_vm1, %v2286_v2 }
  0x45   : > { %1964 = vmatprep.mubr.msk.f32.mxu1 %vm2287_vm1, %v2286_v2 }
  0x47   : > { %1863 = vmatmul.mubr.f32.vlgmr.msra.gmra.mrb[0].mxu0 %v2409_v13 }
  0x48   : > { %1965 = vmatmul.mubr.f32.vlgmr.msra.gmra.mrb[0].mxu1 %v2409_v13  ;;  %1865 = vmatprep.mubr.msk.f32.mxu0 %vm2287_vm1, %v2286_v2 }
  0x49   : > { %1967 = vmatprep.mubr.msk.f32.mxu1 %vm2287_vm1, %v2286_v2  ;;  %1878 = vmatpush3.msra.mxu0 %v2432_v22 }
  0x4a   : > { %1980 = vmatpush3.msra.mxu1 %v2434_v23  ;;  %1894 = vmatprep.subr.mxu0 %v2286_v2 }
  0x4b   : > { %1996 = vmatprep.subr.mxu1 %v2286_v2  ;;  %1866 = vmatmul.mubr.f32.gmra.mrb[2].mxu0 %v2412_v14 }
  0x4c   : > { %1968 = vmatmul.mubr.f32.gmra.mrb[2].mxu1 %v2412_v14  ;;  %1868 = vmatprep.mubr.msk.f32.mxu0 %vm2287_vm1, %v2286_v2 }
  0x4d   : > { %1970 = vmatprep.mubr.msk.f32.mxu1 %vm2287_vm1, %v2286_v2 }
  0x4f   : > { %1869 = vmatmul.mubr.f32.gmra.mrb[4].mxu0 %v2424_v17 }
  0x50   : > { %1971 = vmatmul.mubr.f32.gmra.mrb[4].mxu1 %v2424_v17  ;;  %1871 = vmatprep.mubr.msk.f32.mxu0 %vm2287_vm1, %v2286_v2 }
  0x51   : > { %1973 = vmatprep.mubr.msk.f32.mxu1 %vm2287_vm1, %v2286_v2 }
  0x53   : > { %1872 = vmatmul.mubr.f32.gmra.mrb[6].mxu0 %v2446_v28 }
  0x54   : > { %1974 = vmatmul.mubr.f32.gmra.mrb[6].mxu1 %v2446_v28  ;;  %1874 = vmatprep.mubr.msk.f32.mxu0 %vm2287_vm1, %v2286_v2 }
  0x55   : > { %1976 = vmatprep.mubr.msk.f32.mxu1 %vm2287_vm1, %v2286_v2 }
  0x57   : > { %1875 = vmatmul.mubr.f32.gmra.mrb[8].mxu0 %v2466_v37 }
  0x58   : > { %1977 = vmatmul.mubr.f32.gmra.mrb[8].mxu1 %v2466_v37  ;;  %1879 = vmatprep.mubr.msk.f32.mxu0 %vm2287_vm1, %v2286_v2 }
  0x59   : > { %1981 = vmatprep.mubr.msk.f32.mxu1 %vm2287_vm1, %v2286_v2 }
  0x5b   : > { %1880 = vmatmul.mubr.f32.vlgmr.msra.gmra.mrb[0].mxu0 %v2427_v20 }
  0x5c   : > { %1982 = vmatmul.mubr.f32.vlgmr.msra.gmra.mrb[0].mxu1 %v2427_v20  ;;  %1882 = vmatprep.mubr.msk.f32.mxu0 %vm2287_vm1, %v2286_v2 }
  0x5d   : > { %1984 = vmatprep.mubr.msk.f32.mxu1 %vm2287_vm1, %v2286_v2  ;;  %1895 = vmatpush3.msra.mxu0 %v407_v32 }
  0x5e   : > { %1997 = vmatpush3.msra.mxu1 %v1060_v33  ;;  %1911 = vmatprep.subr.mxu0 %v2286_v2 }
  0x5f   : > { %2013 = vmatprep.subr.mxu1 %v2286_v2  ;;  %1883 = vmatmul.mubr.f32.gmra.mrb[2].mxu0 %v2430_v21 }
  0x60   : > { %1985 = vmatmul.mubr.f32.gmra.mrb[2].mxu1 %v2430_v21  ;;  %1885 = vmatprep.mubr.msk.f32.mxu0 %vm2287_vm1, %v2286_v2 }
  0x61   : > { %1987 = vmatprep.mubr.msk.f32.mxu1 %vm2287_vm1, %v2286_v2 }
  0x63   : > { %1886 = vmatmul.mubr.f32.gmra.mrb[4].mxu0 %v2443_v27 }
  0x64   : > { %1988 = vmatmul.mubr.f32.gmra.mrb[4].mxu1 %v2443_v27  ;;  %1888 = vmatprep.mubr.msk.f32.mxu0 %vm2287_vm1, %v2286_v2 }
  0x65   : > { %1990 = vmatprep.mubr.msk.f32.mxu1 %vm2287_vm1, %v2286_v2 }
  0x67   : > { %1889 = vmatmul.mubr.f32.gmra.mrb[6].mxu0 %v2463_v36 }
  0x68   : > { %1991 = vmatmul.mubr.f32.gmra.mrb[6].mxu1 %v2463_v36  ;;  %1891 = vmatprep.mubr.msk.f32.mxu0 %vm2287_vm1, %v2286_v2 }
  0x69   : > { %1993 = vmatprep.mubr.msk.f32.mxu1 %vm2287_vm1, %v2286_v2 }
  0x6b   : > { %1892 = vmatmul.mubr.f32.gmra.mrb[8].mxu0 %v2481_v44 }
  0x6c   : > { %1994 = vmatmul.mubr.f32.gmra.mrb[8].mxu1 %v2481_v44  ;;  %1896 = vmatprep.mubr.msk.f32.mxu0 %vm2287_vm1, %v2286_v2  ;;  %v1750_v44 = vld [vmem:[%s2669_s8 + $0x1] ss:$0 sm:$0xff] }
  0x6d   : > { %1998 = vmatprep.mubr.msk.f32.mxu1 %vm2287_vm1, %v2286_v2 }
  0x6f   : > { %1897 = vmatmul.mubr.f32.vlgmr.msra.gmra.mrb[0].mxu0 %v2399_v8 }
  0x70   : > { %1999 = vmatmul.mubr.f32.vlgmr.msra.gmra.mrb[0].mxu1 %v2399_v8  ;;  %1899 = vmatprep.mubr.msk.f32.mxu0 %vm2287_vm1, %v2286_v2 }
  0x71   : > { %2001 = vmatprep.mubr.msk.f32.mxu1 %vm2287_vm1, %v2286_v2  ;;  %1912 = vmatpush3.msra.mxu0 %v2432_v22 }
  0x72   : > { %2014 = vmatpush3.msra.mxu1 %v2434_v23 }
  0x73   : > { %1900 = vmatmul.mubr.f32.gmra.mrb[2].mxu0 %v2401_v9 }
  0x74   : > { %2002 = vmatmul.mubr.f32.gmra.mrb[2].mxu1 %v2401_v9  ;;  %1902 = vmatprep.mubr.msk.f32.mxu0 %vm2287_vm1, %v2286_v2 }
  0x75   : > { %2004 = vmatprep.mubr.msk.f32.mxu1 %vm2287_vm1, %v2286_v2 }
  0x77   : > { %1903 = vmatmul.mubr.f32.gmra.mrb[4].mxu0 %v2405_v12 }
  0x78   : > { %2005 = vmatmul.mubr.f32.gmra.mrb[4].mxu1 %v2405_v12  ;;  %1905 = vmatprep.mubr.msk.f32.mxu0 %vm2287_vm1, %v2286_v2 }
  0x79   : > { %2007 = vmatprep.mubr.msk.f32.mxu1 %vm2287_vm1, %v2286_v2 }
  0x7b   : > { %1906 = vmatmul.mubr.f32.gmra.mrb[6].mxu0 %v2414_v15 }
  0x7c   : > { %2008 = vmatmul.mubr.f32.gmra.mrb[6].mxu1 %v2414_v15  ;;  %1908 = vmatprep.mubr.msk.f32.mxu0 %vm2287_vm1, %v2286_v2 }
  0x7d   : > { %2010 = vmatprep.mubr.msk.f32.mxu1 %vm2287_vm1, %v2286_v2 }
  0x7f   : > { %1909 = vmatmul.mubr.f32.gmra.mrb[8].mxu0 %v2436_v24 }
  0x80   : > { %2011 = vmatmul.mubr.f32.gmra.mrb[8].mxu1 %v2436_v24  ;;  %1913 = vmatprep.mubr.msk.f32.mxu0 %vm2287_vm1, %v2286_v2 }
  0x81   : > { %2015 = vmatprep.mubr.msk.f32.mxu1 %vm2287_vm1, %v2286_v2 }
  0x83   : > { %1914 = vmatmul.mubr.f32.vlgmr.msra.gmra.mrb[0].mxu0 %v2399_v8 }
  0x84   : > { %2016 = vmatmul.mubr.f32.vlgmr.msra.gmra.mrb[0].mxu1 %v2399_v8  ;;  %1916 = vmatprep.mubr.msk.f32.mxu0 %vm2287_vm1, %v2286_v2 }
  0x85   : > { %2018 = vmatprep.mubr.msk.f32.mxu1 %vm2287_vm1, %v2286_v2 }
  0x87   : > { %1917 = vmatmul.mubr.f32.gmra.mrb[2].mxu0 %v2401_v9 }
  0x88   : > { %2019 = vmatmul.mubr.f32.gmra.mrb[2].mxu1 %v2401_v9  ;;  %1919 = vmatprep.mubr.msk.f32.mxu0 %vm2287_vm1, %v2286_v2 }
  0x89   : > { %2021 = vmatprep.mubr.msk.f32.mxu1 %vm2287_vm1, %v2286_v2 }
  0x8b   : > { %1920 = vmatmul.mubr.f32.gmra.mrb[4].mxu0 %v2405_v12 }
  0x8c   : > { %2022 = vmatmul.mubr.f32.gmra.mrb[4].mxu1 %v2405_v12  ;;  %1922 = vmatprep.mubr.msk.f32.mxu0 %vm2287_vm1, %v2286_v2 }
  0x8d   : > { %2024 = vmatprep.mubr.msk.f32.mxu1 %vm2287_vm1, %v2286_v2 }
  0x8f   : > { %1923 = vmatmul.mubr.f32.gmra.mrb[6].mxu0 %v2414_v15 }
  0x90   : > { %2025 = vmatmul.mubr.f32.gmra.mrb[6].mxu1 %v2414_v15  ;;  %1925 = vmatprep.mubr.msk.f32.mxu0 %vm2287_vm1, %v2286_v2 }
  0x91   : > { %2027 = vmatprep.mubr.msk.f32.mxu1 %vm2287_vm1, %v2286_v2 }
  0x93   : > { %1926 = vmatmul.mubr.f32.gmra.mrb[8].mxu0 %v2436_v24 }
  0x94   : > { %2028 = vmatmul.mubr.f32.gmra.mrb[8].mxu1 %v2436_v24 }
 0x156   : > { %v878_v48 = vpop.f32.mrb[0].mxu0 }
 0x157   : > { %v1531_v49 = vpop.f32.mrb[0].mxu1  ;;  %v907_v50 = vmax.f32 %v878_v48, 0.0  ;;  %v1915_v51 = vpop.f32.mrb[1].mxu0  ;;  %v917_v54 = vmul.f32 2.0, %v878_v48 }
 0x158   : > { %v2017_v52 = vpop.f32.mrb[1].mxu1 }
 0x159   : > { %v912_v53 = vmin.f32 %v907_v50, 1.0 }
 0x15a   : > { %v884_v56 = vpop.f32.mrb[2].mxu0 }
 0x15b   : > { %v1537_v57 = vpop.f32.mrb[2].mxu1  ;;  %v922_v58 = vsub.f32 %v912_v53, %v917_v54  ;;  %v908_v59 = vmax.f32 %v884_v56, 0.0  ;;  %v1918_v60 = vpop.f32.mrb[3].mxu0  ;;  %v918_v0 = vmul.f32 2.0, %v884_v56 }
 0x15c   : > { %v2020_v61 = vpop.f32.mrb[3].mxu1 }
 0x15d   : > { %v931_v62 = vmul.f32 %v1749_v55, %v922_v58  ;;  %v913_v63 = vmin.f32 %v908_v59, 1.0 }
 0x15e   : > { %v890_v1 = vpop.f32.mrb[4].mxu0 }
 0x15f   : > { %v1543_v2 = vpop.f32.mrb[4].mxu1  ;;  %v936_v3 = vmul.f32 %v931_v62, %v912_v53  ;;  %v923_v4 = vsub.f32 %v913_v63, %v918_v0  ;;  %v909_v5 = vmax.f32 %v890_v1, 0.0  ;;  %v1921_v6 = vpop.f32.mrb[5].mxu0  ;;  %v919_v11 = vmul.f32 2.0, %v890_v1 }
 0x160   : > { %v2023_v7 = vpop.f32.mrb[5].mxu1 }
 0x161   : > { %v2030_v8 = vadd.f32 %v1531_v49, %v936_v3  ;;  %v932_v9 = vmul.f32 %v1749_v55, %v923_v4  ;;  %v914_v10 = vmin.f32 %v909_v5, 1.0 }
 0x162   : > { %v896_v12 = vpop.f32.mrb[6].mxu0 }
 0x163   : > { %v1549_v13 = vpop.f32.mrb[6].mxu1  ;;  %v1559_v14 = vmax.f32 %v2030_v8, 0.0  ;;  %v937_v15 = vmul.f32 %v932_v9, %v913_v63  ;;  %v924_v16 = vsub.f32 %v914_v10, %v919_v11  ;;  %v910_v17 = vmax.f32 %v896_v12, 0.0  ;;  %v1924_v18 = vpop.f32.mrb[7].mxu0 }
 0x164   : > { %v2026_v19 = vpop.f32.mrb[7].mxu1  ;;  %v920_v23 = vmul.f32 2.0, %v896_v12 }
 0x165   : > { %2196 = vrsqrt.f32 %v1559_v14  ;;  %v2031_v20 = vadd.f32 %v1537_v57, %v937_v15  ;;  %v933_v21 = vmul.f32 %v1749_v55, %v924_v16  ;;  %v915_v22 = vmin.f32 %v910_v17, 1.0 }
 0x166   : > { %v902_v24 = vpop.f32.mrb[8].mxu0  ;;  %vm1566_vm2 = vcmp.eq.f32.partialorder %v1559_v14, inf  ;;  %v1569_v45 = vand.u32 2147483648, %v1559_v14  ;;  %vm1568_vm3 = vcmp.eq.f32.partialorder %v1559_v14, 0.0 }
 0x167   : > { %v1555_v25 = vpop.f32.mrb[8].mxu1  ;;  %v911_v26 = vmax.f32 %v902_v24, 0.0  ;;  %v1927_v27 = vpop.f32.mrb[9].mxu0  ;;  %v1560_v29 = vmax.f32 %v2031_v20, 0.0  ;;  %v938_v30 = vmul.f32 %v933_v21, %v914_v10  ;;  %v925_v31 = vsub.f32 %v915_v22, %v920_v23 }
 0x168   : > { %v2029_v28 = vpop.f32.mrb[9].mxu1  ;;  %v921_v33 = vmul.f32 2.0, %v902_v24 }
 0x169   : > { %v916_v32 = vmin.f32 %v911_v26, 1.0  ;;  %2198 = vrsqrt.f32 %v1560_v29  ;;  %v2032_v34 = vadd.f32 %v1543_v2, %v938_v30  ;;  %v934_v35 = vmul.f32 %v1749_v55, %v925_v31 }
 0x16a   : > { %vm1573_vm4 = vcmp.eq.f32.partialorder %v1560_v29, inf  ;;  %v1576_v54 = vand.u32 2147483648, %v1560_v29  ;;  %vm1575_vm5 = vcmp.eq.f32.partialorder %v1560_v29, 0.0 }
 0x16b   : > { %v926_v36 = vsub.f32 %v916_v32, %v921_v33  ;;  %v1561_v37 = vmax.f32 %v2032_v34, 0.0  ;;  %v939_v38 = vmul.f32 %v934_v35, %v915_v22 }
 0x16d   : > { %v935_v39 = vmul.f32 %v1749_v55, %v926_v36  ;;  %2200 = vrsqrt.f32 %v1561_v37  ;;  %v2033_v42 = vadd.f32 %v1549_v13, %v939_v38  ;;  %vm1580_vm6 = vcmp.eq.f32.partialorder %v1561_v37, inf }
 0x16e   : > { %v1583_v60 = vand.u32 2147483648, %v1561_v37  ;;  %vm1582_vm7 = vcmp.eq.f32.partialorder %v1561_v37, 0.0 }
 0x16f   : > { %v2197_v40 = vpop.eup %2196  ;;  %v940_v43 = vmul.f32 %v935_v39, %v916_v32  ;;  %v1562_v47 = vmax.f32 %v2033_v42, 0.0 }
 0x170   : > { %v1565_v41 = vmul.f32 %v2197_v40, %v1559_v14 }
 0x171   : > { %v2034_v48 = vadd.f32 %v1555_v25, %v940_v43  ;;  %2202 = vrsqrt.f32 %v1562_v47  ;;  %vm1587_vm8 = vcmp.eq.f32.partialorder %v1562_v47, inf  ;;  %v1590_v2 = vand.u32 2147483648, %v1562_v47 }
 0x172   : > { %v1567_v46 = vsel %vm1566_vm2, %v1559_v14, %v1565_v41  ;;  %vm1589_vm9 = vcmp.eq.f32.partialorder %v1562_v47, 0.0 }
 0x173   : > { %v1570_v49 = vsel %vm1568_vm3, %v1569_v45, %v1567_v46  ;;  %v2199_v50 = vpop.eup %2198  ;;  %v1563_v53 = vmax.f32 %v2034_v48, 0.0 }
 0x174   : > { %v1603_v51 = vsub.f32 %v1570_v49, %v1750_v44  ;;  %v1572_v52 = vmul.f32 %v2199_v50, %v1560_v29 }
 0x175   : > { %2204 = vrsqrt.f32 %v1563_v53  ;;  %vm1594_vm10 = vcmp.eq.f32.partialorder %v1563_v53, inf  ;;  %v1597_v8 = vand.u32 2147483648, %v1563_v53  ;;  %vm1596_vm11 = vcmp.eq.f32.partialorder %v1563_v53, 0.0 }
 0x176   : > { %1608 = vst [vmem:[%s2676_s11] sm:$0xff] %v1603_v51  ;;  %v1574_v55 = vsel %vm1573_vm4, %v1560_v29, %v1572_v52 }
 0x177   : > { %v1577_v56 = vsel %vm1575_vm5, %v1576_v54, %v1574_v55  ;;  %v2201_v57 = vpop.eup %2200 }
 0x178   : > { %v1604_v58 = vsub.f32 %v1577_v56, %v1750_v44  ;;  %v1579_v59 = vmul.f32 %v2201_v57, %v1561_v37 }
 0x17a   : > { %1609 = vst [vmem:[%s2676_s11 + $0x8] sm:$0xff] %v1604_v58  ;;  %v1581_v61 = vsel %vm1580_vm6, %v1561_v37, %v1579_v59 }
 0x17b   : > { %v1584_v62 = vsel %vm1582_vm7, %v1583_v60, %v1581_v61  ;;  %v2203_v63 = vpop.eup %2202 }
 0x17c   : > { %v1605_v0 = vsub.f32 %v1584_v62, %v1750_v44  ;;  %v1586_v1 = vmul.f32 %v2203_v63, %v1562_v47 }
 0x17e   : > { %1610 = vst [vmem:[%s2676_s11 + $0x10] sm:$0xff] %v1605_v0  ;;  %v1588_v4 = vsel %vm1587_vm8, %v1562_v47, %v1586_v1 }
 0x17f   : > { %v2205_v3 = vpop.eup %2204  ;;  %v1591_v5 = vsel %vm1589_vm9, %v1590_v2, %v1588_v4 }
 0x180   : > { %v1593_v6 = vmul.f32 %v2205_v3, %v1563_v53  ;;  %v1606_v7 = vsub.f32 %v1591_v5, %v1750_v44 }
 0x182   : > { %v1595_v9 = vsel %vm1594_vm10, %v1563_v53, %v1593_v6  ;;  %1611 = vst [vmem:[%s2676_s11 + $0x18] sm:$0xff] %v1606_v7 }
 0x183   : > { %v1598_v10 = vsel %vm1596_vm11, %v1597_v8, %v1595_v9 }
 0x184   : > { %v1607_v11 = vsub.f32 %v1598_v10, %v1750_v44 }
 0x186   : > { %1612 = vst [vmem:[%s2676_s11 + $0x20] sm:$0xff] %v1607_v11 }
 0x187   : > { %2219 = shalt.err (!%p2216_p5)
}
 0x188   : > { %s2220_s5 = scalar_lea.hbm %s2686_s22, 640  ;;  %s2224_s8 = scalar_lea.hbm %s2744_s4, 1280 }
 0x189   : > { %p2221_p6 = scmp.ne.s32.totalorder %s2686_s22, %s2220_s5  ;;  %p2225_p10 = scmp.lt.u32.totalorder %s2686_s22, %s2744_s4 }
 0x18a   : > { %p2226_p11 = scmp.lt.u32.totalorder %s2224_s8, %s2220_s5  ;;  %p2228_p13 = scmp.lt.u32.totalorder %s2220_s5, %s2686_s22 }
 0x18b   : > { %p2222_p7 = pnand %p2221_p6, %p2357_p4 }
 0x18c   : > { %p2227_p12 = por %p2226_p11, %p2225_p10 }
 0x18d   : > { %p2223_p9 = pneg %p2222_p7 }
 0x18e   : > { %p2229_p0 = por %p2228_p13, %p2227_p12 }
 0x190   : > { %p2230_p1 = pnand %p2229_p0, %p2223_p9 }
 0x192   : > { %2233 = shalt.err (!%p2230_p1)
}
 0x193   : > { %s2289_s11 = smov 128   ;;  %s2290_s12 = smov 256  }
 0x194   : > { %s2291_s14 = smov 8  }
 0x195   : > { %2136 = dma.vmem_to_hbm [thread:$0]  (%p2357_p4), %s2689_s13, 640, %s2686_s22, %s2694_s18, %s2289_s11, %s2290_s12, %s2291_s14  }
 0x196 PF: > { %p2142_p2 = scmp.ge.s32.totalorder %s2284_s20, 2  ;;  %s1644_s21 = sand.u32 1, %s2264_s15  }
 0x197   : > { %s1645_s24 = scalar_lea.sflag [#allocation3], %s1644_s21 }
 0x198   : > { %p2139_p3 = pnand %p2142_p2, %p2364_p8 }
 0x19a   : > { %2259 = dma.done.wait (!%p2139_p3), %s1645_s24, 640  }
 0x19b   : > { %2261 = vsyncadd (!%p2139_p3), %s1645_s24, 4294966656  ;;  %s17_s20 = sadd.s32 1, %s2284_s20   ;;  %s2747_s15 = smov %s2268_s16 }
 0x19c   : > { %p14_p5 = scmp.ge.s32.totalorder %s17_s20, 4   ;;  %s2748_s16 = smov %s2272_s17 }
 0x19d   : > { %s2749_s17 = smov %s2370_s28  ;;  %s2750_s18 = smov %s2280_s19 }
 0x19e   : > { %s2751_s19 = smov %s2753_s23  ;;  %16 = sbr.rel (!%p14_p5) target bundleno = 4 (0x4), region = 80 }
 0x1a5   :  { %1650 = vsyncpa [#allocation3], 1 }
 0x1a6   :  { %1652 = vsyncpa [#allocation3 + $0x1], 1 }

</bundles_post_ra>
